<compile_context>
chip_gen: v7x
topology: tpu7x:2x2x1
jax: 0.10.0
libtpu: 0.0.40
codegen_flags: <defaults>
</compile_context>

<pallas_src>
import math

import jax
import jax.numpy as jnp
from jax.experimental import pallas as pl
from jax.experimental.pallas import tpu as pltpu


# ----------------------------------------------------------------------------
# Generation-aware VMEM sizing
# ----------------------------------------------------------------------------
def _vmem_budget_and_limit():
    """(tile budget, scoped vmem limit) ≈ (0.45, 0.75) x physical VMEM.
    v5e/v6e (128 MiB) -> ~57 MiB budget / 96 MiB limit; v7x (64 MiB) -> ~28 / 48."""
    cap = 64 * 1024 * 1024
    try:
        info = pltpu.get_tpu_info()
        cap = int(getattr(info, "vmem_capacity_bytes", cap)) or cap
    except Exception:
        pass
    return int(cap * 0.45), int(cap * 0.75)


def _choose_m_tile(m_pad, b, ci, co, *, max_tile, budget_bytes):
    """Largest lane tile (multiple of 128, divisor of m_pad) whose double-buffered
    working set (2 x planes + 2 w planes + 2 out planes, f32) fits budget_bytes."""
    per_lane = 2 * 4 * (2 * ci * b + 2 * ci * co + 2 * b * co)
    cap = max(128, min(max_tile, (budget_bytes // per_lane) // 128 * 128, m_pad))
    for t in range(cap, 0, -128):
        if m_pad % t == 0:
            return t
    return 128


def _choose_lane_chunk(m_tile, b, co, *, max_chunk, acc_budget_bytes=96 * 1024):
    """Compute chunk along the lane axis: keeps the two f32 accumulators of shape
    (B, Co, chunk) within ~acc_budget_bytes (<= ~24 vregs) so they stay resident
    in the vreg file regardless of how large the DMA tile (m_tile) is."""
    co_eff = ((co + 7) // 8) * 8            # sublane-tile rows actually occupied
    cap = acc_budget_bytes // (2 * 4 * b * co_eff)
    cap = max(128, min(max_chunk, cap // 128 * 128, m_tile))
    for lc in range(cap, 0, -128):
        if m_tile % lc == 0:
            return lc
    return 128


# ----------------------------------------------------------------------------
# Pallas kernel: per-(corner, M-tile) complex channel contraction.
# Refs (leading corner dim squeezed away by the BlockSpec):
#   xr_ref, xi_ref : (Ci, B,  MT)   Re / Im of the x_ft corner block
#   wr_ref, wi_ref : (Ci, Co, MT)   Re / Im of the weights (only 2 planes in HBM)
#   or_ref, oi_ref : (B,  Co, MT)   Re / Im of the result
# ----------------------------------------------------------------------------
def _make_spectral_kernel(lane_chunk, ci_unroll):
    def kernel(xr_ref, xi_ref, wr_ref, wi_ref, or_ref, oi_ref):
        ci, b, mt = xr_ref.shape
        co = wr_ref.shape[1]
        n_chunks = mt // lane_chunk

        # Lane-chunk loop keeps accumulator live ranges small (no vreg spills);
        # the Ci reduction loop is innermost with a capped unroll.
        @pl.loop(0, n_chunks)
        def _(c):
            s = pl.multiple_of(c * lane_chunk, 128)

            def body(i, carry):
                acc_r, acc_i = carry
                xr = xr_ref[i, :, pl.ds(s, lane_chunk)][:, None, :]   # (B, 1, lc)
                xi = xi_ref[i, :, pl.ds(s, lane_chunk)][:, None, :]
                wr = wr_ref[i, :, pl.ds(s, lane_chunk)][None, :, :]   # (1, Co, lc)
                wi = wi_ref[i, :, pl.ds(s, lane_chunk)][None, :, :]
                # Plain 4-multiply complex product: the extra VALU multiply (vs
                # Gauss) is free slack on this DMA-bound kernel, and it saves a
                # full third weight plane of HBM traffic.
                acc_r = acc_r + (xr * wr - xi * wi)
                acc_i = acc_i + (xr * wi + xi * wr)
                return acc_r, acc_i

            zeros = jnp.zeros((b, co, lane_chunk), jnp.float32)
            acc_r, acc_i = jax.lax.fori_loop(0, ci, body, (zeros, zeros),
                                             unroll=ci_unroll)
            or_ref[:, :, pl.ds(s, lane_chunk)] = acc_r
            oi_ref[:, :, pl.ds(s, lane_chunk)] = acc_i

    return kernel


def spectral_corner_matmul(xr, xi, wr, wi, *, m_tile, lane_chunk, ci_unroll,
                           vmem_limit_bytes):
    """xr/xi: (8, Ci, B, M_pad) f32; wr/wi: (8, Ci, Co, M_pad) f32
    -> (out_r, out_i): (8, B, Co, M_pad) f32."""
    n_corner, ci, b, m_pad = xr.shape
    co = wr.shape[2]
    n_m = m_pad // m_tile

    x_spec = pl.BlockSpec((None, ci, b, m_tile), lambda c, m: (c, 0, 0, m))
    w_spec = pl.BlockSpec((None, ci, co, m_tile), lambda c, m: (c, 0, 0, m))
    o_spec = pl.BlockSpec((None, b, co, m_tile), lambda c, m: (c, 0, 0, m))

    out_shape = (
        jax.ShapeDtypeStruct((n_corner, b, co, m_pad), jnp.float32),
        jax.ShapeDtypeStruct((n_corner, b, co, m_pad), jnp.float32),
    )

    return pl.pallas_call(
        _make_spectral_kernel(lane_chunk, ci_unroll),
        out_shape=out_shape,
        grid=(n_corner, n_m),
        in_specs=[x_spec, x_spec, w_spec, w_spec],
        out_specs=(o_spec, o_spec),
        compiler_params=pltpu.CompilerParams(
            # Both axes independent; the leading 8-corner axis shards 4/4 across
            # the two TensorCores on v7x megacore.
            dimension_semantics=("parallel", "parallel"),
            vmem_limit_bytes=vmem_limit_bytes,
        ),
    )(xr, xi, wr, wi)


# ----------------------------------------------------------------------------
# One-time (per layer) weight preprocessing — hoisted out of the forward pass.
# ----------------------------------------------------------------------------
def prepare_spectral_weights(weights):
    """weights: list of 8 complex64 (Ci, Co, m1, m2, m3, m4) arrays.
    Returns (wr_pad, wi_pad): (8, Ci, Co, M_pad) f32 planes, mode axis flattened
    and zero-padded to a multiple of 128.  The jitted forward then DMAs exactly
    these planes — no per-call reshuffling of the (dominant) weight volume."""
    ci, co = weights[0].shape[:2]
    m = math.prod(weights[0].shape[2:])
    m_pad = ((m + 127) // 128) * 128
    w = jnp.stack([jnp.reshape(wk, (ci, co, m)) for wk in weights], axis=0)
    pad = ((0, 0), (0, 0), (0, 0), (0, m_pad - m))
    wr = jnp.pad(jnp.real(w).astype(jnp.float32), pad)
    wi = jnp.pad(jnp.imag(w).astype(jnp.float32), pad)
    return wr, wi


# ----------------------------------------------------------------------------
# SpectralConv4d forward
# ----------------------------------------------------------------------------
def spectral_conv4d(x, wr_pad, wi_pad, modes, *, max_m_tile=2048, max_lane_chunk=512):
    """x: (B, Ci, S1, S2, S3, S4) float32.
    wr_pad / wi_pad: (8, Ci, Co, M_pad) f32 from prepare_spectral_weights.
    modes: (m1, m2, m3, m4), static."""
    m1, m2, m3, m4 = modes
    B, Ci, S1, S2, S3, S4 = x.shape
    Co = wr_pad.shape[2]
    S4r = S4 // 2 + 1
    M = m1 * m2 * m3 * m4
    M_pad = wr_pad.shape[3]

    # TODO(synk): rfftn/irfftn have no Pallas equivalent; computed with jnp.fft.
    x_ft = jnp.fft.rfftn(x.astype(jnp.float32), axes=(-4, -3, -2, -1))  # complex64

    lo1, hi1 = slice(0, m1), slice(S1 - m1, S1)
    lo2, hi2 = slice(0, m2), slice(S2 - m2, S2)
    lo3, hi3 = slice(0, m3), slice(S3 - m3, S3)
    # Corner ordering matches weights1..weights8 in the PyTorch module.
    corners = [
        (lo1, lo2, lo3),
        (hi1, lo2, lo3),
        (lo1, hi2, lo3),
        (lo1, lo2, hi3),
        (hi1, hi2, lo3),
        (hi1, lo2, hi3),
        (lo1, hi2, hi3),
        (hi1, hi2, hi3),
    ]

    # Gather corner blocks of x_ft directly in (Ci, B, M) order (the axis swap is
    # folded into the corner gather itself — no separate materialized transpose),
    # split real/imag, and pad the lane (M) axis to a multiple of 128 so the
    # kernel gets dense 128-lane vregs and unmasked stores.
    x_blocks = jnp.stack(
        [jnp.transpose(x_ft[:, :, s1, s2, s3, :m4],
                       (1, 0, 2, 3, 4, 5)).reshape(Ci, B, M)
         for (s1, s2, s3) in corners],
        axis=0)                                              # (8, Ci, B, M) complex64
    pad = ((0, 0), (0, 0), (0, 0), (0, M_pad - M))
    xr = jnp.pad(jnp.real(x_blocks).astype(jnp.float32), pad)
    xi = jnp.pad(jnp.imag(x_blocks).astype(jnp.float32), pad)

    budget, vmem_limit = _vmem_budget_and_limit()
    m_tile = _choose_m_tile(M_pad, B, Ci, Co, max_tile=max_m_tile, budget_bytes=budget)
    lane_chunk = _choose_lane_chunk(m_tile, B, Co, max_chunk=max_lane_chunk)
    ci_unroll = max(1, min(Ci, 8))

    out_r, out_i = spectral_corner_matmul(
        xr, xi, wr_pad, wi_pad,
        m_tile=m_tile, lane_chunk=lane_chunk, ci_unroll=ci_unroll,
        vmem_limit_bytes=vmem_limit)
    out_blocks = (out_r[..., :M] + 1j * out_i[..., :M]).astype(jnp.complex64)  # (8,B,Co,M)

    # Scatter corner results into the zero-initialized spectral output.  (As in
    # the PyTorch module, if 2*m_k > S_k later corners silently overwrite.)
    out_ft = jnp.zeros((B, Co, S1, S2, S3, S4r), dtype=jnp.complex64)
    for c, (s1, s2, s3) in enumerate(corners):
        blk = out_blocks[c].reshape(B, Co, m1, m2, m3, m4)
        out_ft = out_ft.at[:, :, s1, s2, s3, :m4].set(blk)

    y = jnp.fft.irfftn(out_ft, s=(S1, S2, S3, S4), axes=(-4, -3, -2, -1))
    return y.astype(jnp.float32)


# jit the wrapper so the gather / real-imag split / pad / scatter around the
# Pallas call fuse into a handful of XLA passes instead of many HBM round trips.
spectral_conv4d_jit = jax.jit(
    spectral_conv4d, static_argnames=("modes", "max_m_tile", "max_lane_chunk"))


# ----------------------------------------------------------------------------
# Pure-JAX reference (mirrors the PyTorch forward exactly) for validation.
# ----------------------------------------------------------------------------
def spectral_conv4d_ref(x, weights, modes):
    m1, m2, m3, m4 = modes
    B, Ci, S1, S2, S3, S4 = x.shape
    Co = weights[0].shape[1]
    S4r = S4 // 2 + 1

    x_ft = jnp.fft.rfftn(x.astype(jnp.float32), axes=(-4, -3, -2, -1))
    out_ft = jnp.zeros((B, Co, S1, S2, S3, S4r), dtype=jnp.complex64)

    lo1, hi1 = slice(0, m1), slice(S1 - m1, S1)
    lo2, hi2 = slice(0, m2), slice(S2 - m2, S2)
    lo3, hi3 = slice(0, m3), slice(S3 - m3, S3)
    corners = [
        (lo1, lo2, lo3), (hi1, lo2, lo3), (lo1, hi2, lo3), (lo1, lo2, hi3),
        (hi1, hi2, lo3), (hi1, lo2, hi3), (lo1, hi2, hi3), (hi1, hi2, hi3),
    ]
    for (s1, s2, s3), w in zip(corners, weights):
        blk = x_ft[:, :, s1, s2, s3, :m4]
        res = jnp.einsum('bixyzt,ioxyzt->boxyzt', blk, w)
        out_ft = out_ft.at[:, :, s1, s2, s3, :m4].set(res)

    return jnp.fft.irfftn(out_ft, s=(S1, S2, S3, S4),
                          axes=(-4, -3, -2, -1)).astype(jnp.float32)


def _make_inputs(key, B, Ci, Co, spatial, modes):
    S1, S2, S3, S4 = spatial
    kx, *kw = jax.random.split(key, 17)
    x = jax.random.normal(kx, (B, Ci, S1, S2, S3, S4), dtype=jnp.float32)
    scale = 1.0 / (Ci * Co)
    weights = []
    for i in range(8):
        wr = jax.random.uniform(kw[2 * i], (Ci, Co) + modes, dtype=jnp.float32)
        wi = jax.random.uniform(kw[2 * i + 1], (Ci, Co) + modes, dtype=jnp.float32)
        weights.append((scale * (wr + 1j * wi)).astype(jnp.complex64))
    return x, weights


if __name__ == "__main__":
    key = jax.random.PRNGKey(0)
    k1, k2 = jax.random.split(key)

    B, Ci, Co = 2, 4, 4
    spatial = (8, 8, 8, 8)

    # Config A: module-consistent small shapes (M=81 -> padded to 128, one M tile).
    modes_a = (3, 3, 3, 3)
    x_a, w_a = _make_inputs(k1, B, Ci, Co, spatial, modes_a)
    wr_a, wi_a = prepare_spectral_weights(w_a)          # one-time weight prep
    y_a = jax.block_until_ready(spectral_conv4d_jit(x_a, wr_a, wi_a, modes=modes_a))
    y_a_ref = jax.block_until_ready(spectral_conv4d_ref(x_a, w_a, modes_a))
    assert y_a.shape == (B, Co) + spatial, y_a.shape
    err_a = float(jnp.max(jnp.abs(y_a - y_a_ref)))
    assert err_a < 1e-4, f"config A max abs error {err_a}"

    # Config B: exercises the M (lane) grid axis: M=192 -> M_pad=256, m_tile=128.
    modes_b = (4, 4, 4, 3)
    x_b, w_b = _make_inputs(k2, B, Ci, Co, spatial, modes_b)
    wr_b, wi_b = prepare_spectral_weights(w_b)
    y_b = jax.block_until_ready(
        spectral_conv4d_jit(x_b, wr_b, wi_b, modes=modes_b, max_m_tile=128))
    y_b_ref = jax.block_until_ready(spectral_conv4d_ref(x_b, w_b, modes_b))
    assert y_b.shape == (B, Co) + spatial, y_b.shape
    err_b = float(jnp.max(jnp.abs(y_b - y_b_ref)))
    assert err_b < 1e-4, f"config B max abs error {err_b}"

    # Config C: exercises the in-kernel lane-chunk loop (m_tile=256, chunk=128).
    y_c = jax.block_until_ready(
        spectral_conv4d_jit(x_b, wr_b, wi_b, modes=modes_b,
                            max_m_tile=256, max_lane_chunk=128))
    err_c = float(jnp.max(jnp.abs(y_c - y_b_ref)))
    assert err_c < 1e-4, f"config C max abs error {err_c}"

    print("KERNEL_OK")
</pallas_src>

<mosaic_0001>
module attributes {stable_mosaic.version = 11 : i64} {
  func.func @kernel(%arg0: i32, %arg1: i32, %arg2: memref<1x4x2x128xf32, #tpu.memory_space<vmem>>, %arg3: memref<1x4x2x128xf32, #tpu.memory_space<vmem>>, %arg4: memref<1x4x4x128xf32, #tpu.memory_space<vmem>>, %arg5: memref<1x4x4x128xf32, #tpu.memory_space<vmem>>, %arg6: memref<1x2x4x128xf32, #tpu.memory_space<vmem>>, %arg7: memref<1x2x4x128xf32, #tpu.memory_space<vmem>>) attributes {dimension_semantics = [#tpu.dimension_semantics<parallel>, #tpu.dimension_semantics<parallel>], iteration_bounds = array<i64: 8, 1>, scalar_prefetch = 0 : i64, scratch_operands = 0 : i64, tpu.core_type = #tpu.core_type<tc>, window_params = [{transform_indices = @transform_0, window_bounds = array<i64: 1, 4, 2, 128>}, {transform_indices = @transform_1, window_bounds = array<i64: 1, 4, 2, 128>}, {transform_indices = @transform_2, window_bounds = array<i64: 1, 4, 4, 128>}, {transform_indices = @transform_3, window_bounds = array<i64: 1, 4, 4, 128>}, {transform_indices = @transform_4, window_bounds = array<i64: 1, 2, 4, 128>}, {transform_indices = @transform_5, window_bounds = array<i64: 1, 2, 4, 128>}]} {
    %c0_i32 = arith.constant 0 : i32
    %c1_i32 = arith.constant 1 : i32
    %0 = arith.muli %c0_i32, %c1_i32 : i32
    %c0_i32_0 = arith.constant 0 : i32
    %1 = arith.addi %c0_i32_0, %0 : i32
    %c128_i32 = arith.constant 128 : i32
    %2 = arith.muli %1, %c128_i32 : i32
    %3 = tpu.assume_multiple %2, 128 : i32
    %cst = arith.constant 0.000000e+00 : f32
    %4 = vector.broadcast %cst : f32 to vector<2x4x128xf32>
    %c0_i32_1 = arith.constant 0 : i32
    %c0 = arith.constant 0 : index
    %5 = arith.index_cast %c0_i32_1 : i32 to index
    %c0_2 = arith.constant 0 : index
    %6 = arith.index_cast %3 : i32 to index
    %7 = vector.load %arg2[%c0, %5, %c0_2, %6] : memref<1x4x2x128xf32, #tpu.memory_space<vmem>>, vector<1x1x2x128xf32>
    %8 = vector.shape_cast %7 : vector<1x1x2x128xf32> to vector<2x128xf32>
    %9 = vector.shape_cast %8 : vector<2x128xf32> to vector<2x1x128xf32>
    %c0_3 = arith.constant 0 : index
    %10 = arith.index_cast %c0_i32_1 : i32 to index
    %c0_4 = arith.constant 0 : index
    %11 = arith.index_cast %3 : i32 to index
    %12 = vector.load %arg3[%c0_3, %10, %c0_4, %11] : memref<1x4x2x128xf32, #tpu.memory_space<vmem>>, vector<1x1x2x128xf32>
    %13 = vector.shape_cast %12 : vector<1x1x2x128xf32> to vector<2x128xf32>
    %14 = vector.shape_cast %13 : vector<2x128xf32> to vector<2x1x128xf32>
    %c0_5 = arith.constant 0 : index
    %15 = arith.index_cast %c0_i32_1 : i32 to index
    %c0_6 = arith.constant 0 : index
    %16 = arith.index_cast %3 : i32 to index
    %17 = vector.load %arg4[%c0_5, %15, %c0_6, %16] : memref<1x4x4x128xf32, #tpu.memory_space<vmem>>, vector<1x1x4x128xf32>
    %18 = vector.shape_cast %17 : vector<1x1x4x128xf32> to vector<4x128xf32>
    %19 = vector.shape_cast %18 : vector<4x128xf32> to vector<1x4x128xf32>
    %c0_7 = arith.constant 0 : index
    %20 = arith.index_cast %c0_i32_1 : i32 to index
    %c0_8 = arith.constant 0 : index
    %21 = arith.index_cast %3 : i32 to index
    %22 = vector.load %arg5[%c0_7, %20, %c0_8, %21] : memref<1x4x4x128xf32, #tpu.memory_space<vmem>>, vector<1x1x4x128xf32>
    %23 = vector.shape_cast %22 : vector<1x1x4x128xf32> to vector<4x128xf32>
    %24 = vector.shape_cast %23 : vector<4x128xf32> to vector<1x4x128xf32>
    %25 = vector.broadcast %9 : vector<2x1x128xf32> to vector<2x4x128xf32>
    %26 = vector.broadcast %19 : vector<1x4x128xf32> to vector<2x4x128xf32>
    %27 = arith.mulf %25, %26 : vector<2x4x128xf32>
    %28 = vector.broadcast %14 : vector<2x1x128xf32> to vector<2x4x128xf32>
    %29 = vector.broadcast %24 : vector<1x4x128xf32> to vector<2x4x128xf32>
    %30 = arith.mulf %28, %29 : vector<2x4x128xf32>
    %31 = arith.subf %27, %30 : vector<2x4x128xf32>
    %32 = arith.addf %4, %31 : vector<2x4x128xf32>
    %33 = vector.broadcast %9 : vector<2x1x128xf32> to vector<2x4x128xf32>
    %34 = vector.broadcast %24 : vector<1x4x128xf32> to vector<2x4x128xf32>
    %35 = arith.mulf %33, %34 : vector<2x4x128xf32>
    %36 = vector.broadcast %14 : vector<2x1x128xf32> to vector<2x4x128xf32>
    %37 = vector.broadcast %19 : vector<1x4x128xf32> to vector<2x4x128xf32>
    %38 = arith.mulf %36, %37 : vector<2x4x128xf32>
    %39 = arith.addf %35, %38 : vector<2x4x128xf32>
    %40 = arith.addf %4, %39 : vector<2x4x128xf32>
    %c1_i32_9 = arith.constant 1 : i32
    %c0_10 = arith.constant 0 : index
    %41 = arith.index_cast %c1_i32_9 : i32 to index
    %c0_11 = arith.constant 0 : index
    %42 = arith.index_cast %3 : i32 to index
    %43 = vector.load %arg2[%c0_10, %41, %c0_11, %42] : memref<1x4x2x128xf32, #tpu.memory_space<vmem>>, vector<1x1x2x128xf32>
    %44 = vector.shape_cast %43 : vector<1x1x2x128xf32> to vector<2x128xf32>
    %45 = vector.shape_cast %44 : vector<2x128xf32> to vector<2x1x128xf32>
    %c0_12 = arith.constant 0 : index
    %46 = arith.index_cast %c1_i32_9 : i32 to index
    %c0_13 = arith.constant 0 : index
    %47 = arith.index_cast %3 : i32 to index
    %48 = vector.load %arg3[%c0_12, %46, %c0_13, %47] : memref<1x4x2x128xf32, #tpu.memory_space<vmem>>, vector<1x1x2x128xf32>
    %49 = vector.shape_cast %48 : vector<1x1x2x128xf32> to vector<2x128xf32>
    %50 = vector.shape_cast %49 : vector<2x128xf32> to vector<2x1x128xf32>
    %c0_14 = arith.constant 0 : index
    %51 = arith.index_cast %c1_i32_9 : i32 to index
    %c0_15 = arith.constant 0 : index
    %52 = arith.index_cast %3 : i32 to index
    %53 = vector.load %arg4[%c0_14, %51, %c0_15, %52] : memref<1x4x4x128xf32, #tpu.memory_space<vmem>>, vector<1x1x4x128xf32>
    %54 = vector.shape_cast %53 : vector<1x1x4x128xf32> to vector<4x128xf32>
    %55 = vector.shape_cast %54 : vector<4x128xf32> to vector<1x4x128xf32>
    %c0_16 = arith.constant 0 : index
    %56 = arith.index_cast %c1_i32_9 : i32 to index
    %c0_17 = arith.constant 0 : index
    %57 = arith.index_cast %3 : i32 to index
    %58 = vector.load %arg5[%c0_16, %56, %c0_17, %57] : memref<1x4x4x128xf32, #tpu.memory_space<vmem>>, vector<1x1x4x128xf32>
    %59 = vector.shape_cast %58 : vector<1x1x4x128xf32> to vector<4x128xf32>
    %60 = vector.shape_cast %59 : vector<4x128xf32> to vector<1x4x128xf32>
    %61 = vector.broadcast %45 : vector<2x1x128xf32> to vector<2x4x128xf32>
    %62 = vector.broadcast %55 : vector<1x4x128xf32> to vector<2x4x128xf32>
    %63 = arith.mulf %61, %62 : vector<2x4x128xf32>
    %64 = vector.broadcast %50 : vector<2x1x128xf32> to vector<2x4x128xf32>
    %65 = vector.broadcast %60 : vector<1x4x128xf32> to vector<2x4x128xf32>
    %66 = arith.mulf %64, %65 : vector<2x4x128xf32>
    %67 = arith.subf %63, %66 : vector<2x4x128xf32>
    %68 = arith.addf %32, %67 : vector<2x4x128xf32>
    %69 = vector.broadcast %45 : vector<2x1x128xf32> to vector<2x4x128xf32>
    %70 = vector.broadcast %60 : vector<1x4x128xf32> to vector<2x4x128xf32>
    %71 = arith.mulf %69, %70 : vector<2x4x128xf32>
    %72 = vector.broadcast %50 : vector<2x1x128xf32> to vector<2x4x128xf32>
    %73 = vector.broadcast %55 : vector<1x4x128xf32> to vector<2x4x128xf32>
    %74 = arith.mulf %72, %73 : vector<2x4x128xf32>
    %75 = arith.addf %71, %74 : vector<2x4x128xf32>
    %76 = arith.addf %40, %75 : vector<2x4x128xf32>
    %c2_i32 = arith.constant 2 : i32
    %c0_18 = arith.constant 0 : index
    %77 = arith.index_cast %c2_i32 : i32 to index
    %c0_19 = arith.constant 0 : index
    %78 = arith.index_cast %3 : i32 to index
    %79 = vector.load %arg2[%c0_18, %77, %c0_19, %78] : memref<1x4x2x128xf32, #tpu.memory_space<vmem>>, vector<1x1x2x128xf32>
    %80 = vector.shape_cast %79 : vector<1x1x2x128xf32> to vector<2x128xf32>
    %81 = vector.shape_cast %80 : vector<2x128xf32> to vector<2x1x128xf32>
    %c0_20 = arith.constant 0 : index
    %82 = arith.index_cast %c2_i32 : i32 to index
    %c0_21 = arith.constant 0 : index
    %83 = arith.index_cast %3 : i32 to index
    %84 = vector.load %arg3[%c0_20, %82, %c0_21, %83] : memref<1x4x2x128xf32, #tpu.memory_space<vmem>>, vector<1x1x2x128xf32>
    %85 = vector.shape_cast %84 : vector<1x1x2x128xf32> to vector<2x128xf32>
    %86 = vector.shape_cast %85 : vector<2x128xf32> to vector<2x1x128xf32>
    %c0_22 = arith.constant 0 : index
    %87 = arith.index_cast %c2_i32 : i32 to index
    %c0_23 = arith.constant 0 : index
    %88 = arith.index_cast %3 : i32 to index
    %89 = vector.load %arg4[%c0_22, %87, %c0_23, %88] : memref<1x4x4x128xf32, #tpu.memory_space<vmem>>, vector<1x1x4x128xf32>
    %90 = vector.shape_cast %89 : vector<1x1x4x128xf32> to vector<4x128xf32>
    %91 = vector.shape_cast %90 : vector<4x128xf32> to vector<1x4x128xf32>
    %c0_24 = arith.constant 0 : index
    %92 = arith.index_cast %c2_i32 : i32 to index
    %c0_25 = arith.constant 0 : index
    %93 = arith.index_cast %3 : i32 to index
    %94 = vector.load %arg5[%c0_24, %92, %c0_25, %93] : memref<1x4x4x128xf32, #tpu.memory_space<vmem>>, vector<1x1x4x128xf32>
    %95 = vector.shape_cast %94 : vector<1x1x4x128xf32> to vector<4x128xf32>
    %96 = vector.shape_cast %95 : vector<4x128xf32> to vector<1x4x128xf32>
    %97 = vector.broadcast %81 : vector<2x1x128xf32> to vector<2x4x128xf32>
    %98 = vector.broadcast %91 : vector<1x4x128xf32> to vector<2x4x128xf32>
    %99 = arith.mulf %97, %98 : vector<2x4x128xf32>
    %100 = vector.broadcast %86 : vector<2x1x128xf32> to vector<2x4x128xf32>
    %101 = vector.broadcast %96 : vector<1x4x128xf32> to vector<2x4x128xf32>
    %102 = arith.mulf %100, %101 : vector<2x4x128xf32>
    %103 = arith.subf %99, %102 : vector<2x4x128xf32>
    %104 = arith.addf %68, %103 : vector<2x4x128xf32>
    %105 = vector.broadcast %81 : vector<2x1x128xf32> to vector<2x4x128xf32>
    %106 = vector.broadcast %96 : vector<1x4x128xf32> to vector<2x4x128xf32>
    %107 = arith.mulf %105, %106 : vector<2x4x128xf32>
    %108 = vector.broadcast %86 : vector<2x1x128xf32> to vector<2x4x128xf32>
    %109 = vector.broadcast %91 : vector<1x4x128xf32> to vector<2x4x128xf32>
    %110 = arith.mulf %108, %109 : vector<2x4x128xf32>
    %111 = arith.addf %107, %110 : vector<2x4x128xf32>
    %112 = arith.addf %76, %111 : vector<2x4x128xf32>
    %c3_i32 = arith.constant 3 : i32
    %c0_26 = arith.constant 0 : index
    %113 = arith.index_cast %c3_i32 : i32 to index
    %c0_27 = arith.constant 0 : index
    %114 = arith.index_cast %3 : i32 to index
    %115 = vector.load %arg2[%c0_26, %113, %c0_27, %114] : memref<1x4x2x128xf32, #tpu.memory_space<vmem>>, vector<1x1x2x128xf32>
    %116 = vector.shape_cast %115 : vector<1x1x2x128xf32> to vector<2x128xf32>
    %117 = vector.shape_cast %116 : vector<2x128xf32> to vector<2x1x128xf32>
    %c0_28 = arith.constant 0 : index
    %118 = arith.index_cast %c3_i32 : i32 to index
    %c0_29 = arith.constant 0 : index
    %119 = arith.index_cast %3 : i32 to index
    %120 = vector.load %arg3[%c0_28, %118, %c0_29, %119] : memref<1x4x2x128xf32, #tpu.memory_space<vmem>>, vector<1x1x2x128xf32>
    %121 = vector.shape_cast %120 : vector<1x1x2x128xf32> to vector<2x128xf32>
    %122 = vector.shape_cast %121 : vector<2x128xf32> to vector<2x1x128xf32>
    %c0_30 = arith.constant 0 : index
    %123 = arith.index_cast %c3_i32 : i32 to index
    %c0_31 = arith.constant 0 : index
    %124 = arith.index_cast %3 : i32 to index
    %125 = vector.load %arg4[%c0_30, %123, %c0_31, %124] : memref<1x4x4x128xf32, #tpu.memory_space<vmem>>, vector<1x1x4x128xf32>
    %126 = vector.shape_cast %125 : vector<1x1x4x128xf32> to vector<4x128xf32>
    %127 = vector.shape_cast %126 : vector<4x128xf32> to vector<1x4x128xf32>
    %c0_32 = arith.constant 0 : index
    %128 = arith.index_cast %c3_i32 : i32 to index
    %c0_33 = arith.constant 0 : index
    %129 = arith.index_cast %3 : i32 to index
    %130 = vector.load %arg5[%c0_32, %128, %c0_33, %129] : memref<1x4x4x128xf32, #tpu.memory_space<vmem>>, vector<1x1x4x128xf32>
    %131 = vector.shape_cast %130 : vector<1x1x4x128xf32> to vector<4x128xf32>
    %132 = vector.shape_cast %131 : vector<4x128xf32> to vector<1x4x128xf32>
    %133 = vector.broadcast %117 : vector<2x1x128xf32> to vector<2x4x128xf32>
    %134 = vector.broadcast %127 : vector<1x4x128xf32> to vector<2x4x128xf32>
    %135 = arith.mulf %133, %134 : vector<2x4x128xf32>
    %136 = vector.broadcast %122 : vector<2x1x128xf32> to vector<2x4x128xf32>
    %137 = vector.broadcast %132 : vector<1x4x128xf32> to vector<2x4x128xf32>
    %138 = arith.mulf %136, %137 : vector<2x4x128xf32>
    %139 = arith.subf %135, %138 : vector<2x4x128xf32>
    %140 = arith.addf %104, %139 : vector<2x4x128xf32>
    %141 = vector.broadcast %117 : vector<2x1x128xf32> to vector<2x4x128xf32>
    %142 = vector.broadcast %132 : vector<1x4x128xf32> to vector<2x4x128xf32>
    %143 = arith.mulf %141, %142 : vector<2x4x128xf32>
    %144 = vector.broadcast %122 : vector<2x1x128xf32> to vector<2x4x128xf32>
    %145 = vector.broadcast %127 : vector<1x4x128xf32> to vector<2x4x128xf32>
    %146 = arith.mulf %144, %145 : vector<2x4x128xf32>
    %147 = arith.addf %143, %146 : vector<2x4x128xf32>
    %148 = arith.addf %112, %147 : vector<2x4x128xf32>
    %c4_i32 = arith.constant 4 : i32
    %c0_34 = arith.constant 0 : index
    %c0_35 = arith.constant 0 : index
    %c0_36 = arith.constant 0 : index
    %149 = arith.index_cast %3 : i32 to index
    %150 = vector.load %arg6[%c0_34, %c0_35, %c0_36, %149] : memref<1x2x4x128xf32, #tpu.memory_space<vmem>>, vector<1x2x4x128xf32>
    %151 = vector.shape_cast %150 : vector<1x2x4x128xf32> to vector<2x4x128xf32>
    %152 = vector.shape_cast %140 : vector<2x4x128xf32> to vector<1x2x4x128xf32>
    tpu.vector_store %arg6[%c0_34, %c0_35, %c0_36, %149], %152 {strides = array<i32>} : memref<1x2x4x128xf32, #tpu.memory_space<vmem>>, vector<1x2x4x128xf32>,
    %c0_37 = arith.constant 0 : index
    %c0_38 = arith.constant 0 : index
    %c0_39 = arith.constant 0 : index
    %153 = arith.index_cast %3 : i32 to index
    %154 = vector.load %arg7[%c0_37, %c0_38, %c0_39, %153] : memref<1x2x4x128xf32, #tpu.memory_space<vmem>>, vector<1x2x4x128xf32>
    %155 = vector.shape_cast %154 : vector<1x2x4x128xf32> to vector<2x4x128xf32>
    %156 = vector.shape_cast %148 : vector<2x4x128xf32> to vector<1x2x4x128xf32>
    tpu.vector_store %arg7[%c0_37, %c0_38, %c0_39, %153], %156 {strides = array<i32>} : memref<1x2x4x128xf32, #tpu.memory_space<vmem>>, vector<1x2x4x128xf32>,
    %c1_i32_40 = arith.constant 1 : i32
    return
  }
  func.func @transform_0(%arg0: i32, %arg1: i32) -> (i32, i32, i32, i32) {
    %c0_i32 = arith.constant 0 : i32
    %c0_i32_0 = arith.constant 0 : i32
    %c0_i32_1 = arith.constant 0 : i32
    return %arg0, %c0_i32, %c0_i32_0, %arg1 : i32, i32, i32, i32
  }
  func.func @transform_1(%arg0: i32, %arg1: i32) -> (i32, i32, i32, i32) {
    %c0_i32 = arith.constant 0 : i32
    %c0_i32_0 = arith.constant 0 : i32
    %c0_i32_1 = arith.constant 0 : i32
    return %arg0, %c0_i32, %c0_i32_0, %arg1 : i32, i32, i32, i32
  }
  func.func @transform_2(%arg0: i32, %arg1: i32) -> (i32, i32, i32, i32) {
    %c0_i32 = arith.constant 0 : i32
    %c0_i32_0 = arith.constant 0 : i32
    %c0_i32_1 = arith.constant 0 : i32
    return %arg0, %c0_i32, %c0_i32_0, %arg1 : i32, i32, i32, i32
  }
  func.func @transform_3(%arg0: i32, %arg1: i32) -> (i32, i32, i32, i32) {
    %c0_i32 = arith.constant 0 : i32
    %c0_i32_0 = arith.constant 0 : i32
    %c0_i32_1 = arith.constant 0 : i32
    return %arg0, %c0_i32, %c0_i32_0, %arg1 : i32, i32, i32, i32
  }
  func.func @transform_4(%arg0: i32, %arg1: i32) -> (i32, i32, i32, i32) {
    %c0_i32 = arith.constant 0 : i32
    %c0_i32_0 = arith.constant 0 : i32
    %c0_i32_1 = arith.constant 0 : i32
    return %arg0, %c0_i32, %c0_i32_0, %arg1 : i32, i32, i32, i32
  }
  func.func @transform_5(%arg0: i32, %arg1: i32) -> (i32, i32, i32, i32) {
    %c0_i32 = arith.constant 0 : i32
    %c0_i32_0 = arith.constant 0 : i32
    %c0_i32_1 = arith.constant 0 : i32
    return %arg0, %c0_i32, %c0_i32_0, %arg1 : i32, i32, i32, i32
  }
}

</mosaic_0001>

<bundles_post_ra>
// kernel: spectral_conv4d.1
= control target key start
LH: loop header
LB: loop body
LE: loop exit
PB: predicated region body
PF: predicated region fallthrough
CT: control target
= control target key end

     0   :  { %s1056_s18 = smov 0   ;;  %s1058_s19 = smov 0   ;;  %s1231_s0 = inlined_call_operand.vmem [shape: f32[8,4,2,128], index: 0, kind: input, shape index: {}]   ;;  %s1232_s1 = inlined_call_operand.vmem [shape: f32[8,4,2,128], index: 1, kind: input, shape index: {}]   ;;  %s1233_s2 = inlined_call_operand.vmem [shape: f32[8,4,4,128], index: 2, kind: input, shape index: {}]   ;;  %s1234_s3 = inlined_call_operand.vmem [shape: f32[8,4,4,128], index: 3, kind: input, shape index: {}]   ;;  %s1235_s4 = inlined_call_operand.vmem [shape: f32[8,2,4,128], index: 4, kind: output, shape index: {0}]   ;;  %s1236_s5 = inlined_call_operand.vmem [shape: f32[8,2,4,128], index: 5, kind: output, shape index: {1}]  }
   0x1   :  { %s1060_s20 = smov 0  }
   0x2 LB: > { %s28_s21 = sadd.s32 1, %s1019_s19  ;;  %p935_p0 = scmp.ge.s32.totalorder %s1023_s20, 1  ;;  %s1023_s20 = sphi %s1060_s20, %s16_s20   ;;  %s1019_s19 = sphi %s1058_s19, %s1238_s19   ;;  %s1015_s18 = sphi %s1056_s18, %s1237_s18  }
   0x3   : > { %p30_p1 = scmp.ge.s32.totalorder %s28_s21, 8  ;;  %p256_p2 = scmp.lt.s32.totalorder %s1023_s20, 9 }
   0x5   : > { %s1240_s21 = smov (%p30_p1, %s28_s21), 0  ;;  %p257_p3 = pnand %p935_p0, %p256_p2 }
   0x6   : > { %p322_p4 = scmp.lt.s32.totalorder (!%p257_p3), %s1015_s18, 7  ;;  %v383_v0 = vlaneseq (!%p257_p3)  ;;  %v1025_v1 = vmov (!%p257_p3), 1966171168  }
   0x7   : > { %260 = sbr.rel (%p257_p3) target bundleno = 51 (0x33), region = 36  ;;  %v381_v2 = vunpack.c.l.s4 (!%p257_p3), %v1025_v1 }
   0x8   : > { %v384_v3 = vshrl.u32 (!%p257_p3), %v383_v0, 7 }
   0x9   : > { %v382_v4 = vunpack.c.0.s8 (!%p257_p3), %v381_v2 }
   0xa   : > { %v1090_v6 = vsub.s32 (!%p257_p3), 0, %v384_v3 }
   0xb   : > { %v1088_v5 = vsub.s32 (!%p257_p3), %v382_v4, %v384_v3 }
   0xe   : > { %s1242_s18 = smov (!%p322_p4, %s1015_s18), 7 }
   0xf   : > { %s1074_s22 = sshll.u32 %s1242_s18, 3  ;;  %s972_s23 = sshll.u32 %s1242_s18, 4 }
  0x10   : > { %s1080_s26 = scalar_lea.vmem %s1231_s0, %s1074_s22  ;;  %s1086_s29 = scalar_lea.vmem %s1232_s1, %s1074_s22 }
  0x11   : > { %s1095_s7 = scalar_lea.vmem %s1233_s2, %s972_s23  ;;  %s1100_s10 = scalar_lea.vmem %s1234_s3, %s972_s23  ;;  %v948_v7 = vld.sshfl [vmem:[%s1080_s26] sm:$0x11 pattern:$0x75316420] }
  0x12   : > { %v379_v8 = vcombine.high %v948_v7, %v948_v7  ;;  %v386_v9 = vrot.slane %v948_v7, %v1088_v5  ;;  %v949_v10 = vld.sshfl [vmem:[%s1086_s29] sm:$0x11 pattern:$0x75316420]  ;;  %v1122_v24 = vld [vmem:[%s1095_s7 + $0x4] sm:$0xf]  ;;  %s1184_s13 = scalar_lea.vmem %s1235_s4, %s1074_s22  ;;  %s369_s16 = scalar_lea.vmem %s1236_s5, %s1074_s22 }
  0x13   : > { %v403_v11 = vcombine.high %v949_v10, %v949_v10  ;;  %v410_v12 = vrot.slane %v949_v10, %v1088_v5  ;;  %v1107_v13 = vld [vmem:[%s1095_s7] sm:$0xf]  ;;  %v957_v25 = vld.sshfl [vmem:[%s1080_s26 + $0x4] sm:$0x11 pattern:$0x75316420] }
  0x14   : > { %v951_v14 = vld.sshfl [vmem:[%s1080_s26 + $0x2] sm:$0x11 pattern:$0x75316420]  ;;  %v1114_v16 = vrot.slane %v386_v9, %v1090_v6  ;;  %v393_v20 = vrot.slane %v379_v8, %v1088_v5  ;;  %v1129_v28 = vld [vmem:[%s1100_s10 + $0x4] sm:$0xf]  ;;  %v565_v30 = vrot.slane %v957_v25, %v1088_v5  ;;  %v558_v62 = vcombine.high %v957_v25, %v957_v25 }
  0x15   : > { %v1111_v15 = vld [vmem:[%s1100_s10] sm:$0xf]  ;;  %v467_v17 = vcombine.high %v951_v14, %v951_v14  ;;  %v474_v18 = vrot.slane %v951_v14, %v1088_v5  ;;  %v435_v21 = vrot.slane %v410_v12, %v1090_v6  ;;  %v417_v26 = vrot.slane %v403_v11, %v1088_v5  ;;  %v959_v31 = vld.sshfl [vmem:[%s1086_s29 + $0x4] sm:$0x11 pattern:$0x75316420] }
  0x16   : > { %v953_v19 = vld.sshfl [vmem:[%s1086_s29 + $0x2] sm:$0x11 pattern:$0x75316420]  ;;  %v430_v27 = vmul.f32 %v1114_v16, %v1107_v13  ;;  %v1135_v32 = vrot.slane %v393_v20, %v1090_v6  ;;  %v590_v35 = vrot.slane %v959_v31, %v1088_v5  ;;  %v1141_v36 = vld [vmem:[%s1095_s7 + $0x8] sm:$0xf]  ;;  %v606_v41 = vrot.slane %v565_v30, %v1090_v6 }
  0x17   : > { %v492_v22 = vcombine.high %v953_v19, %v953_v19  ;;  %v499_v23 = vrot.slane %v953_v19, %v1088_v5  ;;  %v515_v29 = vrot.slane %v474_v18, %v1090_v6  ;;  %v442_v33 = vmul.f32 %v435_v21, %v1111_v15  ;;  %v963_v37 = vld.sshfl [vmem:[%s1080_s26 + $0x6] sm:$0x11 pattern:$0x75316420]  ;;  %v1149_v40 = vld [vmem:[%s1100_s10 + $0x8] sm:$0xf] }
  0x18   : > { %v1145_v38 = vrot.slane %v417_v26, %v1090_v6  ;;  %v657_v42 = vrot.slane %v963_v37, %v1088_v5  ;;  %v965_v43 = vld.sshfl [vmem:[%s1086_s29 + $0x6] sm:$0x11 pattern:$0x75316420]  ;;  %v431_v44 = vmul.f32 %v1135_v32, %v1107_v13  ;;  %v618_v47 = vrot.slane %v590_v35, %v1090_v6  ;;  %v1160_v49 = vld [vmem:[%s1095_s7 + $0xc] sm:$0xf] }
  0x19   : > { %v527_v34 = vrot.slane %v499_v23, %v1090_v6  ;;  %v522_v39 = vmul.f32 %v1122_v24, %v515_v29  ;;  %v444_v45 = vsub.f32 %v430_v27, %v442_v33  ;;  %v682_v48 = vrot.slane %v965_v43, %v1088_v5  ;;  %v1164_v51 = vld [vmem:[%s1100_s10 + $0xc] sm:$0xf] }
  0x1a   : > { %v613_v50 = vmul.f32 %v1141_v36, %v606_v41  ;;  %v698_v52 = vrot.slane %v657_v42, %v1090_v6  ;;  %v443_v53 = vmul.f32 %v1145_v38, %v1111_v15  ;;  %v481_v54 = vrot.slane %v467_v17, %v1088_v5 }
  0x1b   : > { %v534_v46 = vmul.f32 %v1129_v28, %v527_v34  ;;  %v625_v56 = vmul.f32 %v1149_v40, %v618_v47  ;;  %v710_v57 = vrot.slane %v682_v48, %v1090_v6  ;;  %v506_v58 = vrot.slane %v492_v22, %v1088_v5 }
  0x1c   : > { %v705_v59 = vmul.f32 %v1160_v49, %v698_v52  ;;  %v445_v60 = vsub.f32 %v431_v44, %v443_v53  ;;  %v519_v61 = vrot.slane %v481_v54, %v1090_v6  ;;  %v572_v4 = vrot.slane %v558_v62, %v1088_v5 }
  0x1d   : > { %v536_v55 = vsub.f32 %v522_v39, %v534_v46  ;;  %v627_v0 = vsub.f32 %v613_v50, %v625_v56  ;;  %v717_v1 = vmul.f32 %v1164_v51, %v710_v57  ;;  %v531_v2 = vrot.slane %v506_v58, %v1090_v6 }
  0x1e   : > { %v523_v3 = vmul.f32 %v1122_v24, %v519_v61  ;;  %v583_v7 = vcombine.high %v959_v31, %v959_v31  ;;  %v650_v8 = vcombine.high %v963_v37, %v963_v37  ;;  %v675_v12 = vcombine.high %v965_v43, %v965_v43 }
  0x1f   : > { %v538_v63 = vadd.f32 %v536_v55, %v444_v45  ;;  %v719_v10 = vsub.f32 %v705_v59, %v717_v1  ;;  %v535_v11 = vmul.f32 %v1129_v28, %v531_v2  ;;  %v610_v17 = vrot.slane %v572_v4, %v1090_v6 }
  0x20   : > { %v597_v14 = vrot.slane %v583_v7, %v1088_v5  ;;  %v664_v18 = vrot.slane %v650_v8, %v1088_v5  ;;  %v448_v19 = vmul.f32 %v1114_v16, %v1111_v15  ;;  %v689_v23 = vrot.slane %v675_v12, %v1088_v5 }
  0x21   : > { %v629_v9 = vadd.f32 %v627_v0, %v538_v63  ;;  %v537_v22 = vsub.f32 %v523_v3, %v535_v11  ;;  %v450_v25 = vmul.f32 %v435_v21, %v1107_v13  ;;  %v614_v26 = vmul.f32 %v1141_v36, %v610_v17 }
  0x22   : > { %v622_v27 = vrot.slane %v597_v14, %v1090_v6  ;;  %v702_v30 = vrot.slane %v664_v18, %v1090_v6  ;;  %v540_v31 = vmul.f32 %v1129_v28, %v515_v29  ;;  %v714_v35 = vrot.slane %v689_v23, %v1090_v6 }
  0x23   : > { %v721_v20 = vadd.f32 %v719_v10, %v629_v9  ;;  %v539_v33 = vadd.f32 %v537_v22, %v445_v60  ;;  %v452_v37 = vadd.f32 %v450_v25, %v448_v19  ;;  %v542_v16 = vmul.f32 %v1122_v24, %v527_v34 }
  0x24   : > { %v626_v39 = vmul.f32 %v1149_v40, %v622_v27  ;;  %v706_v5 = vmul.f32 %v1160_v49, %v702_v30  ;;  %v631_v21 = vmul.f32 %v1149_v40, %v606_v41  ;;  %v633_v42 = vmul.f32 %v1141_v36, %v618_v47 }
  0x25   : > { %731 = vst [vmem:[%s1184_s13] sm:$0xf] %v721_v20  ;;  %v718_v43 = vmul.f32 %v1164_v51, %v714_v35  ;;  %v544_v44 = vadd.f32 %v542_v16, %v540_v31  ;;  %v723_v29 = vmul.f32 %v1164_v51, %v698_v52  ;;  %v725_v45 = vmul.f32 %v1160_v49, %v710_v57 }
  0x26   : > { %v628_v46 = vsub.f32 %v614_v26, %v626_v39  ;;  %v635_v6 = vadd.f32 %v633_v42, %v631_v21  ;;  %v449_v34 = vmul.f32 %v1135_v32, %v1111_v15  ;;  %v451_v48 = vmul.f32 %v1145_v38, %v1107_v13 }
  0x27   : > { %v720_v50 = vsub.f32 %v706_v5, %v718_v43  ;;  %v546_v41 = vadd.f32 %v544_v44, %v452_v37  ;;  %v727_v47 = vadd.f32 %v725_v45, %v723_v29  ;;  %v541_v53 = vmul.f32 %v1129_v28, %v519_v61 }
  0x28   : > { %v630_v54 = vadd.f32 %v628_v46, %v539_v33  ;;  %v453_v55 = vadd.f32 %v451_v48, %v449_v34  ;;  %v543_v52 = vmul.f32 %v1122_v24, %v531_v2  ;;  %v632_v56 = vmul.f32 %v1149_v40, %v610_v17 }
  0x29   : > { %v637_v57 = vadd.f32 %v635_v6, %v546_v41  ;;  %v634_v58 = vmul.f32 %v1141_v36, %v622_v27  ;;  %v724_v15 = vmul.f32 %v1164_v51, %v702_v30  ;;  %v726_v32 = vmul.f32 %v1160_v49, %v714_v35 }
  0x2a   : > { %v722_v13 = vadd.f32 %v720_v50, %v630_v54  ;;  %v545_v38 = vadd.f32 %v543_v52, %v541_v53 }
  0x2b   : > { %v729_v28 = vadd.f32 %v727_v47, %v637_v57  ;;  %v636_v59 = vadd.f32 %v634_v58, %v632_v56  ;;  %v728_v24 = vadd.f32 %v726_v32, %v724_v15 }
  0x2c   : > { %732 = vst [vmem:[%s1184_s13 + $0x4] sm:$0xf] %v722_v13  ;;  %v547_v60 = vadd.f32 %v545_v38, %v453_v55 }
  0x2d   : > { %733 = vst [vmem:[%s369_s16] sm:$0xf] %v729_v28 }
  0x2e   : > { %v638_v40 = vadd.f32 %v636_v59, %v547_v60 }
  0x30   : > { %v730_v61 = vadd.f32 %v728_v24, %v638_v40 }
  0x32   : > { %734 = vst [vmem:[%s369_s16 + $0x4] sm:$0xf] %v730_v61 }
  0x33 PF: > { %s16_s20 = sadd.s32 1, %s1023_s20   ;;  %s1237_s18 = smov %s1019_s19 }
  0x34   : > { %p13_p5 = scmp.ge.s32.totalorder %s16_s20, 10   ;;  %s1238_s19 = smov %s1240_s21 }
  0x36   :  { %15 = sbr.rel (!%p13_p5) target bundleno = 2 (0x2), region = 99 }

// kernel: reverse.1
= control target key start
LH: loop header
LB: loop body
LE: loop exit
PB: predicated region body
PF: predicated region fallthrough
CT: control target
= control target key end

     0   :  { %s2312_s0 = inlined_call_operand.vmem [shape: f32[2,4,8,8,8,3], index: 0, kind: input, shape index: {}]   ;;  %s2313_s1 = inlined_call_operand.vmem [shape: f32[2,4,8,8,8,3], index: 1, kind: output, shape index: {}]  }
   0x1   :  { %v768_v0 = vld [vmem:[%s2312_s0 + $0x10] sm:$0xff]  ;;  %v783_v8 = vld [vmem:[%s2312_s0 + $0x28] sm:$0xff]  ;;  %v799_v16 = vld [vmem:[%s2312_s0 + $0x40] sm:$0xff] }
   0x2   :  { %v769_v1 = vld [vmem:[%s2312_s0 + $0x310] sm:$0xff]  ;;  %4 = vst [vmem:[%s2313_s1] sm:$0xff] %v768_v0  ;;  %784 = vst [vmem:[%s2313_s1 + $0x18] sm:$0xff] %v783_v8  ;;  %v785_v9 = vld [vmem:[%s2312_s0 + $0x328] sm:$0xff] }
   0x3   :  { %v771_v2 = vld [vmem:[%s2312_s0 + $0xd0] sm:$0xff]  ;;  %770 = vst [vmem:[%s2313_s1 + $0x300] sm:$0xff] %v769_v1  ;;  %v787_v10 = vld [vmem:[%s2312_s0 + $0xe8] sm:$0xff]  ;;  %786 = vst [vmem:[%s2313_s1 + $0x318] sm:$0xff] %v785_v9 }
   0x4   :  { %772 = vst [vmem:[%s2313_s1 + $0xc0] sm:$0xff] %v771_v2  ;;  %v773_v3 = vld [vmem:[%s2312_s0 + $0x3d0] sm:$0xff]  ;;  %v789_v11 = vld [vmem:[%s2312_s0 + $0x3e8] sm:$0xff]  ;;  %788 = vst [vmem:[%s2313_s1 + $0xd8] sm:$0xff] %v787_v10 }
   0x5   :  { %v775_v4 = vld [vmem:[%s2312_s0 + $0x190] sm:$0xff]  ;;  %774 = vst [vmem:[%s2313_s1 + $0x3c0] sm:$0xff] %v773_v3  ;;  %790 = vst [vmem:[%s2313_s1 + $0x3d8] sm:$0xff] %v789_v11  ;;  %v791_v12 = vld [vmem:[%s2312_s0 + $0x1a8] sm:$0xff] }
   0x6   :  { %v777_v5 = vld [vmem:[%s2312_s0 + $0x490] sm:$0xff]  ;;  %776 = vst [vmem:[%s2313_s1 + $0x180] sm:$0xff] %v775_v4  ;;  %v793_v13 = vld [vmem:[%s2312_s0 + $0x4a8] sm:$0xff]  ;;  %792 = vst [vmem:[%s2313_s1 + $0x198] sm:$0xff] %v791_v12 }
   0x7   :  { %778 = vst [vmem:[%s2313_s1 + $0x480] sm:$0xff] %v777_v5  ;;  %v779_v6 = vld [vmem:[%s2312_s0 + $0x250] sm:$0xff]  ;;  %v795_v14 = vld [vmem:[%s2312_s0 + $0x268] sm:$0xff]  ;;  %794 = vst [vmem:[%s2313_s1 + $0x498] sm:$0xff] %v793_v13 }
   0x8   :  { %v781_v7 = vld [vmem:[%s2312_s0 + $0x550] sm:$0xff]  ;;  %780 = vst [vmem:[%s2313_s1 + $0x240] sm:$0xff] %v779_v6  ;;  %796 = vst [vmem:[%s2313_s1 + $0x258] sm:$0xff] %v795_v14  ;;  %v797_v15 = vld [vmem:[%s2312_s0 + $0x568] sm:$0xff] }
   0x9   :  { %782 = vst [vmem:[%s2313_s1 + $0x540] sm:$0xff] %v781_v7  ;;  %v801_v17 = vld [vmem:[%s2312_s0 + $0x340] sm:$0xff]  ;;  %798 = vst [vmem:[%s2313_s1 + $0x558] sm:$0xff] %v797_v15  ;;  %v815_v24 = vld [vmem:[%s2312_s0 + $0x58] sm:$0xff] }
   0xa   :  { %800 = vst [vmem:[%s2313_s1 + $0x30] sm:$0xff] %v799_v16  ;;  %802 = vst [vmem:[%s2313_s1 + $0x330] sm:$0xff] %v801_v17  ;;  %v803_v18 = vld [vmem:[%s2312_s0 + $0x100] sm:$0xff]  ;;  %v817_v25 = vld [vmem:[%s2312_s0 + $0x358] sm:$0xff] }
   0xb   :  { %v805_v19 = vld [vmem:[%s2312_s0 + $0x400] sm:$0xff]  ;;  %804 = vst [vmem:[%s2313_s1 + $0xf0] sm:$0xff] %v803_v18  ;;  %v819_v26 = vld [vmem:[%s2312_s0 + $0x118] sm:$0xff]  ;;  %816 = vst [vmem:[%s2313_s1 + $0x48] sm:$0xff] %v815_v24 }
   0xc   :  { %v807_v20 = vld [vmem:[%s2312_s0 + $0x1c0] sm:$0xff]  ;;  %806 = vst [vmem:[%s2313_s1 + $0x3f0] sm:$0xff] %v805_v19  ;;  %818 = vst [vmem:[%s2313_s1 + $0x348] sm:$0xff] %v817_v25  ;;  %v821_v27 = vld [vmem:[%s2312_s0 + $0x418] sm:$0xff] }
   0xd   :  { %808 = vst [vmem:[%s2313_s1 + $0x1b0] sm:$0xff] %v807_v20  ;;  %v809_v21 = vld [vmem:[%s2312_s0 + $0x4c0] sm:$0xff]  ;;  %820 = vst [vmem:[%s2313_s1 + $0x108] sm:$0xff] %v819_v26  ;;  %v823_v28 = vld [vmem:[%s2312_s0 + $0x1d8] sm:$0xff] }
   0xe   :  { %v811_v22 = vld [vmem:[%s2312_s0 + $0x280] sm:$0xff]  ;;  %810 = vst [vmem:[%s2313_s1 + $0x4b0] sm:$0xff] %v809_v21  ;;  %v825_v29 = vld [vmem:[%s2312_s0 + $0x4d8] sm:$0xff]  ;;  %822 = vst [vmem:[%s2313_s1 + $0x408] sm:$0xff] %v821_v27 }
   0xf   :  { %v813_v23 = vld [vmem:[%s2312_s0 + $0x580] sm:$0xff]  ;;  %812 = vst [vmem:[%s2313_s1 + $0x270] sm:$0xff] %v811_v22  ;;  %824 = vst [vmem:[%s2313_s1 + $0x1c8] sm:$0xff] %v823_v28  ;;  %v827_v30 = vld [vmem:[%s2312_s0 + $0x298] sm:$0xff] }
  0x10   :  { %814 = vst [vmem:[%s2313_s1 + $0x570] sm:$0xff] %v813_v23  ;;  %826 = vst [vmem:[%s2313_s1 + $0x4c8] sm:$0xff] %v825_v29  ;;  %v829_v31 = vld [vmem:[%s2312_s0 + $0x598] sm:$0xff]  ;;  %v831_v32 = vld [vmem:[%s2312_s0 + $0x70] sm:$0xff] }
  0x11   :  { %828 = vst [vmem:[%s2313_s1 + $0x288] sm:$0xff] %v827_v30  ;;  %830 = vst [vmem:[%s2313_s1 + $0x588] sm:$0xff] %v829_v31  ;;  %v833_v33 = vld [vmem:[%s2312_s0 + $0x370] sm:$0xff]  ;;  %v847_v40 = vld [vmem:[%s2312_s0 + $0x88] sm:$0xff] }
  0x12   :  { %832 = vst [vmem:[%s2313_s1 + $0x60] sm:$0xff] %v831_v32  ;;  %v835_v34 = vld [vmem:[%s2312_s0 + $0x130] sm:$0xff]  ;;  %834 = vst [vmem:[%s2313_s1 + $0x360] sm:$0xff] %v833_v33  ;;  %v849_v41 = vld [vmem:[%s2312_s0 + $0x388] sm:$0xff] }
  0x13   :  { %v837_v35 = vld [vmem:[%s2312_s0 + $0x430] sm:$0xff]  ;;  %836 = vst [vmem:[%s2313_s1 + $0x120] sm:$0xff] %v835_v34  ;;  %848 = vst [vmem:[%s2313_s1 + $0x78] sm:$0xff] %v847_v40  ;;  %v851_v42 = vld [vmem:[%s2312_s0 + $0x148] sm:$0xff] }
  0x14   :  { %838 = vst [vmem:[%s2313_s1 + $0x420] sm:$0xff] %v837_v35  ;;  %v839_v36 = vld [vmem:[%s2312_s0 + $0x1f0] sm:$0xff]  ;;  %850 = vst [vmem:[%s2313_s1 + $0x378] sm:$0xff] %v849_v41  ;;  %v853_v43 = vld [vmem:[%s2312_s0 + $0x448] sm:$0xff] }
  0x15   :  { %v841_v37 = vld [vmem:[%s2312_s0 + $0x4f0] sm:$0xff]  ;;  %840 = vst [vmem:[%s2313_s1 + $0x1e0] sm:$0xff] %v839_v36  ;;  %v855_v44 = vld [vmem:[%s2312_s0 + $0x208] sm:$0xff]  ;;  %852 = vst [vmem:[%s2313_s1 + $0x138] sm:$0xff] %v851_v42 }
  0x16   :  { %v843_v38 = vld [vmem:[%s2312_s0 + $0x2b0] sm:$0xff]  ;;  %842 = vst [vmem:[%s2313_s1 + $0x4e0] sm:$0xff] %v841_v37  ;;  %854 = vst [vmem:[%s2313_s1 + $0x438] sm:$0xff] %v853_v43  ;;  %v857_v45 = vld [vmem:[%s2312_s0 + $0x508] sm:$0xff] }
  0x17   :  { %844 = vst [vmem:[%s2313_s1 + $0x2a0] sm:$0xff] %v843_v38  ;;  %v845_v39 = vld [vmem:[%s2312_s0 + $0x5b0] sm:$0xff]  ;;  %856 = vst [vmem:[%s2313_s1 + $0x1f8] sm:$0xff] %v855_v44  ;;  %v859_v46 = vld [vmem:[%s2312_s0 + $0x2c8] sm:$0xff] }
  0x18   :  { %846 = vst [vmem:[%s2313_s1 + $0x5a0] sm:$0xff] %v845_v39  ;;  %v861_v47 = vld [vmem:[%s2312_s0 + $0x5c8] sm:$0xff]  ;;  %858 = vst [vmem:[%s2313_s1 + $0x4f8] sm:$0xff] %v857_v45  ;;  %v863_v48 = vld [vmem:[%s2312_s0 + $0xa0] sm:$0xff] }
  0x19   :  { %860 = vst [vmem:[%s2313_s1 + $0x2b8] sm:$0xff] %v859_v46  ;;  %862 = vst [vmem:[%s2313_s1 + $0x5b8] sm:$0xff] %v861_v47  ;;  %v865_v49 = vld [vmem:[%s2312_s0 + $0x3a0] sm:$0xff]  ;;  %v879_v56 = vld [vmem:[%s2312_s0 + $0xb8] sm:$0xff] }
  0x1a   :  { %v867_v50 = vld [vmem:[%s2312_s0 + $0x160] sm:$0xff]  ;;  %864 = vst [vmem:[%s2313_s1 + $0x90] sm:$0xff] %v863_v48  ;;  %866 = vst [vmem:[%s2313_s1 + $0x390] sm:$0xff] %v865_v49  ;;  %v881_v57 = vld [vmem:[%s2312_s0 + $0x3b8] sm:$0xff] }
  0x1b   :  { %868 = vst [vmem:[%s2313_s1 + $0x150] sm:$0xff] %v867_v50  ;;  %v869_v51 = vld [vmem:[%s2312_s0 + $0x460] sm:$0xff]  ;;  %880 = vst [vmem:[%s2313_s1 + $0xa8] sm:$0xff] %v879_v56  ;;  %v883_v58 = vld [vmem:[%s2312_s0 + $0x178] sm:$0xff] }
  0x1c   :  { %v871_v52 = vld [vmem:[%s2312_s0 + $0x220] sm:$0xff]  ;;  %870 = vst [vmem:[%s2313_s1 + $0x450] sm:$0xff] %v869_v51  ;;  %v885_v59 = vld [vmem:[%s2312_s0 + $0x478] sm:$0xff]  ;;  %882 = vst [vmem:[%s2313_s1 + $0x3a8] sm:$0xff] %v881_v57 }
  0x1d   :  { %v873_v53 = vld [vmem:[%s2312_s0 + $0x520] sm:$0xff]  ;;  %872 = vst [vmem:[%s2313_s1 + $0x210] sm:$0xff] %v871_v52  ;;  %884 = vst [vmem:[%s2313_s1 + $0x168] sm:$0xff] %v883_v58  ;;  %v887_v60 = vld [vmem:[%s2312_s0 + $0x238] sm:$0xff] }
  0x1e   :  { %874 = vst [vmem:[%s2313_s1 + $0x510] sm:$0xff] %v873_v53  ;;  %v875_v54 = vld [vmem:[%s2312_s0 + $0x2e0] sm:$0xff]  ;;  %886 = vst [vmem:[%s2313_s1 + $0x468] sm:$0xff] %v885_v59  ;;  %v889_v61 = vld [vmem:[%s2312_s0 + $0x538] sm:$0xff] }
  0x1f   :  { %v877_v55 = vld [vmem:[%s2312_s0 + $0x5e0] sm:$0xff]  ;;  %876 = vst [vmem:[%s2313_s1 + $0x2d0] sm:$0xff] %v875_v54  ;;  %v891_v62 = vld [vmem:[%s2312_s0 + $0x2f8] sm:$0xff]  ;;  %888 = vst [vmem:[%s2313_s1 + $0x228] sm:$0xff] %v887_v60 }
  0x20   :  { %878 = vst [vmem:[%s2313_s1 + $0x5d0] sm:$0xff] %v877_v55  ;;  %890 = vst [vmem:[%s2313_s1 + $0x528] sm:$0xff] %v889_v61  ;;  %v893_v63 = vld [vmem:[%s2312_s0 + $0x5f8] sm:$0xff]  ;;  %v895_v0 = vld [vmem:[%s2312_s0 + $0x8] sm:$0xff] }
  0x21   :  { %892 = vst [vmem:[%s2313_s1 + $0x2e8] sm:$0xff] %v891_v62  ;;  %v897_v1 = vld [vmem:[%s2312_s0 + $0x308] sm:$0xff]  ;;  %894 = vst [vmem:[%s2313_s1 + $0x5e8] sm:$0xff] %v893_v63  ;;  %v911_v8 = vld [vmem:[%s2312_s0 + $0x20] sm:$0xff] }
  0x22   :  { %896 = vst [vmem:[%s2313_s1 + $0x8] sm:$0xff] %v895_v0  ;;  %898 = vst [vmem:[%s2313_s1 + $0x308] sm:$0xff] %v897_v1  ;;  %v899_v2 = vld [vmem:[%s2312_s0 + $0xc8] sm:$0xff]  ;;  %v913_v9 = vld [vmem:[%s2312_s0 + $0x320] sm:$0xff] }
  0x23   :  { %v901_v3 = vld [vmem:[%s2312_s0 + $0x3c8] sm:$0xff]  ;;  %900 = vst [vmem:[%s2313_s1 + $0xc8] sm:$0xff] %v899_v2  ;;  %v915_v10 = vld [vmem:[%s2312_s0 + $0xe0] sm:$0xff]  ;;  %912 = vst [vmem:[%s2313_s1 + $0x20] sm:$0xff] %v911_v8 }
  0x24   :  { %v903_v4 = vld [vmem:[%s2312_s0 + $0x188] sm:$0xff]  ;;  %902 = vst [vmem:[%s2313_s1 + $0x3c8] sm:$0xff] %v901_v3  ;;  %914 = vst [vmem:[%s2313_s1 + $0x320] sm:$0xff] %v913_v9  ;;  %v917_v11 = vld [vmem:[%s2312_s0 + $0x3e0] sm:$0xff] }
  0x25   :  { %904 = vst [vmem:[%s2313_s1 + $0x188] sm:$0xff] %v903_v4  ;;  %v905_v5 = vld [vmem:[%s2312_s0 + $0x488] sm:$0xff]  ;;  %916 = vst [vmem:[%s2313_s1 + $0xe0] sm:$0xff] %v915_v10  ;;  %v919_v12 = vld [vmem:[%s2312_s0 + $0x1a0] sm:$0xff] }
  0x26   :  { %v907_v6 = vld [vmem:[%s2312_s0 + $0x248] sm:$0xff]  ;;  %906 = vst [vmem:[%s2313_s1 + $0x488] sm:$0xff] %v905_v5  ;;  %v921_v13 = vld [vmem:[%s2312_s0 + $0x4a0] sm:$0xff]  ;;  %918 = vst [vmem:[%s2313_s1 + $0x3e0] sm:$0xff] %v917_v11 }
  0x27   :  { %v909_v7 = vld [vmem:[%s2312_s0 + $0x548] sm:$0xff]  ;;  %908 = vst [vmem:[%s2313_s1 + $0x248] sm:$0xff] %v907_v6  ;;  %920 = vst [vmem:[%s2313_s1 + $0x1a0] sm:$0xff] %v919_v12  ;;  %v923_v14 = vld [vmem:[%s2312_s0 + $0x260] sm:$0xff] }
  0x28   :  { %910 = vst [vmem:[%s2313_s1 + $0x548] sm:$0xff] %v909_v7  ;;  %922 = vst [vmem:[%s2313_s1 + $0x4a0] sm:$0xff] %v921_v13  ;;  %v925_v15 = vld [vmem:[%s2312_s0 + $0x560] sm:$0xff]  ;;  %v927_v16 = vld [vmem:[%s2312_s0 + $0x38] sm:$0xff] }
  0x29   :  { %924 = vst [vmem:[%s2313_s1 + $0x260] sm:$0xff] %v923_v14  ;;  %926 = vst [vmem:[%s2313_s1 + $0x560] sm:$0xff] %v925_v15  ;;  %v929_v17 = vld [vmem:[%s2312_s0 + $0x338] sm:$0xff]  ;;  %v943_v24 = vld [vmem:[%s2312_s0 + $0x50] sm:$0xff] }
  0x2a   :  { %928 = vst [vmem:[%s2313_s1 + $0x38] sm:$0xff] %v927_v16  ;;  %v931_v18 = vld [vmem:[%s2312_s0 + $0xf8] sm:$0xff]  ;;  %930 = vst [vmem:[%s2313_s1 + $0x338] sm:$0xff] %v929_v17  ;;  %v945_v25 = vld [vmem:[%s2312_s0 + $0x350] sm:$0xff] }
  0x2b   :  { %v933_v19 = vld [vmem:[%s2312_s0 + $0x3f8] sm:$0xff]  ;;  %932 = vst [vmem:[%s2313_s1 + $0xf8] sm:$0xff] %v931_v18  ;;  %944 = vst [vmem:[%s2313_s1 + $0x50] sm:$0xff] %v943_v24  ;;  %v947_v26 = vld [vmem:[%s2312_s0 + $0x110] sm:$0xff] }
  0x2c   :  { %934 = vst [vmem:[%s2313_s1 + $0x3f8] sm:$0xff] %v933_v19  ;;  %v935_v20 = vld [vmem:[%s2312_s0 + $0x1b8] sm:$0xff]  ;;  %946 = vst [vmem:[%s2313_s1 + $0x350] sm:$0xff] %v945_v25  ;;  %v949_v27 = vld [vmem:[%s2312_s0 + $0x410] sm:$0xff] }
  0x2d   :  { %v937_v21 = vld [vmem:[%s2312_s0 + $0x4b8] sm:$0xff]  ;;  %936 = vst [vmem:[%s2313_s1 + $0x1b8] sm:$0xff] %v935_v20  ;;  %v951_v28 = vld [vmem:[%s2312_s0 + $0x1d0] sm:$0xff]  ;;  %948 = vst [vmem:[%s2313_s1 + $0x110] sm:$0xff] %v947_v26 }
  0x2e   :  { %v939_v22 = vld [vmem:[%s2312_s0 + $0x278] sm:$0xff]  ;;  %938 = vst [vmem:[%s2313_s1 + $0x4b8] sm:$0xff] %v937_v21  ;;  %950 = vst [vmem:[%s2313_s1 + $0x410] sm:$0xff] %v949_v27  ;;  %v953_v29 = vld [vmem:[%s2312_s0 + $0x4d0] sm:$0xff] }
  0x2f   :  { %940 = vst [vmem:[%s2313_s1 + $0x278] sm:$0xff] %v939_v22  ;;  %v941_v23 = vld [vmem:[%s2312_s0 + $0x578] sm:$0xff]  ;;  %952 = vst [vmem:[%s2313_s1 + $0x1d0] sm:$0xff] %v951_v28  ;;  %v955_v30 = vld [vmem:[%s2312_s0 + $0x290] sm:$0xff] }
  0x30   :  { %942 = vst [vmem:[%s2313_s1 + $0x578] sm:$0xff] %v941_v23  ;;  %v957_v31 = vld [vmem:[%s2312_s0 + $0x590] sm:$0xff]  ;;  %954 = vst [vmem:[%s2313_s1 + $0x4d0] sm:$0xff] %v953_v29  ;;  %v959_v32 = vld [vmem:[%s2312_s0 + $0x68] sm:$0xff] }
  0x31   :  { %956 = vst [vmem:[%s2313_s1 + $0x290] sm:$0xff] %v955_v30  ;;  %958 = vst [vmem:[%s2313_s1 + $0x590] sm:$0xff] %v957_v31  ;;  %v961_v33 = vld [vmem:[%s2312_s0 + $0x368] sm:$0xff]  ;;  %v975_v40 = vld [vmem:[%s2312_s0 + $0x80] sm:$0xff] }
  0x32   :  { %v963_v34 = vld [vmem:[%s2312_s0 + $0x128] sm:$0xff]  ;;  %960 = vst [vmem:[%s2313_s1 + $0x68] sm:$0xff] %v959_v32  ;;  %962 = vst [vmem:[%s2313_s1 + $0x368] sm:$0xff] %v961_v33  ;;  %v977_v41 = vld [vmem:[%s2312_s0 + $0x380] sm:$0xff] }
  0x33   :  { %964 = vst [vmem:[%s2313_s1 + $0x128] sm:$0xff] %v963_v34  ;;  %v965_v35 = vld [vmem:[%s2312_s0 + $0x428] sm:$0xff]  ;;  %976 = vst [vmem:[%s2313_s1 + $0x80] sm:$0xff] %v975_v40  ;;  %v979_v42 = vld [vmem:[%s2312_s0 + $0x140] sm:$0xff] }
  0x34   :  { %v967_v36 = vld [vmem:[%s2312_s0 + $0x1e8] sm:$0xff]  ;;  %966 = vst [vmem:[%s2313_s1 + $0x428] sm:$0xff] %v965_v35  ;;  %v981_v43 = vld [vmem:[%s2312_s0 + $0x440] sm:$0xff]  ;;  %978 = vst [vmem:[%s2313_s1 + $0x380] sm:$0xff] %v977_v41 }
  0x35   :  { %v969_v37 = vld [vmem:[%s2312_s0 + $0x4e8] sm:$0xff]  ;;  %968 = vst [vmem:[%s2313_s1 + $0x1e8] sm:$0xff] %v967_v36  ;;  %980 = vst [vmem:[%s2313_s1 + $0x140] sm:$0xff] %v979_v42  ;;  %v983_v44 = vld [vmem:[%s2312_s0 + $0x200] sm:$0xff] }
  0x36   :  { %970 = vst [vmem:[%s2313_s1 + $0x4e8] sm:$0xff] %v969_v37  ;;  %v971_v38 = vld [vmem:[%s2312_s0 + $0x2a8] sm:$0xff]  ;;  %982 = vst [vmem:[%s2313_s1 + $0x440] sm:$0xff] %v981_v43  ;;  %v985_v45 = vld [vmem:[%s2312_s0 + $0x500] sm:$0xff] }
  0x37   :  { %v973_v39 = vld [vmem:[%s2312_s0 + $0x5a8] sm:$0xff]  ;;  %972 = vst [vmem:[%s2313_s1 + $0x2a8] sm:$0xff] %v971_v38  ;;  %v987_v46 = vld [vmem:[%s2312_s0 + $0x2c0] sm:$0xff]  ;;  %984 = vst [vmem:[%s2313_s1 + $0x200] sm:$0xff] %v983_v44 }
  0x38   :  { %974 = vst [vmem:[%s2313_s1 + $0x5a8] sm:$0xff] %v973_v39  ;;  %986 = vst [vmem:[%s2313_s1 + $0x500] sm:$0xff] %v985_v45  ;;  %v989_v47 = vld [vmem:[%s2312_s0 + $0x5c0] sm:$0xff]  ;;  %v991_v48 = vld [vmem:[%s2312_s0 + $0x98] sm:$0xff] }
  0x39   :  { %988 = vst [vmem:[%s2313_s1 + $0x2c0] sm:$0xff] %v987_v46  ;;  %v993_v49 = vld [vmem:[%s2312_s0 + $0x398] sm:$0xff]  ;;  %990 = vst [vmem:[%s2313_s1 + $0x5c0] sm:$0xff] %v989_v47  ;;  %v1007_v56 = vld [vmem:[%s2312_s0 + $0xb0] sm:$0xff] }
  0x3a   :  { %992 = vst [vmem:[%s2313_s1 + $0x98] sm:$0xff] %v991_v48  ;;  %994 = vst [vmem:[%s2313_s1 + $0x398] sm:$0xff] %v993_v49  ;;  %v995_v50 = vld [vmem:[%s2312_s0 + $0x158] sm:$0xff]  ;;  %v1009_v57 = vld [vmem:[%s2312_s0 + $0x3b0] sm:$0xff] }
  0x3b   :  { %v997_v51 = vld [vmem:[%s2312_s0 + $0x458] sm:$0xff]  ;;  %996 = vst [vmem:[%s2313_s1 + $0x158] sm:$0xff] %v995_v50  ;;  %v1011_v58 = vld [vmem:[%s2312_s0 + $0x170] sm:$0xff]  ;;  %1008 = vst [vmem:[%s2313_s1 + $0xb0] sm:$0xff] %v1007_v56 }
  0x3c   :  { %v999_v52 = vld [vmem:[%s2312_s0 + $0x218] sm:$0xff]  ;;  %998 = vst [vmem:[%s2313_s1 + $0x458] sm:$0xff] %v997_v51  ;;  %1010 = vst [vmem:[%s2313_s1 + $0x3b0] sm:$0xff] %v1009_v57  ;;  %v1013_v59 = vld [vmem:[%s2312_s0 + $0x470] sm:$0xff] }
  0x3d   :  { %1000 = vst [vmem:[%s2313_s1 + $0x218] sm:$0xff] %v999_v52  ;;  %v1001_v53 = vld [vmem:[%s2312_s0 + $0x518] sm:$0xff]  ;;  %1012 = vst [vmem:[%s2313_s1 + $0x170] sm:$0xff] %v1011_v58  ;;  %v1015_v60 = vld [vmem:[%s2312_s0 + $0x230] sm:$0xff] }
  0x3e   :  { %v1003_v54 = vld [vmem:[%s2312_s0 + $0x2d8] sm:$0xff]  ;;  %1002 = vst [vmem:[%s2313_s1 + $0x518] sm:$0xff] %v1001_v53  ;;  %v1017_v61 = vld [vmem:[%s2312_s0 + $0x530] sm:$0xff]  ;;  %1014 = vst [vmem:[%s2313_s1 + $0x470] sm:$0xff] %v1013_v59 }
  0x3f   :  { %v1005_v55 = vld [vmem:[%s2312_s0 + $0x5d8] sm:$0xff]  ;;  %1004 = vst [vmem:[%s2313_s1 + $0x2d8] sm:$0xff] %v1003_v54  ;;  %1016 = vst [vmem:[%s2313_s1 + $0x230] sm:$0xff] %v1015_v60  ;;  %v1019_v62 = vld [vmem:[%s2312_s0 + $0x2f0] sm:$0xff] }
  0x40   :  { %1006 = vst [vmem:[%s2313_s1 + $0x5d8] sm:$0xff] %v1005_v55  ;;  %1018 = vst [vmem:[%s2313_s1 + $0x530] sm:$0xff] %v1017_v61  ;;  %v1021_v63 = vld [vmem:[%s2312_s0 + $0x5f0] sm:$0xff]  ;;  %v513_v0 = vld [vmem:[%s2312_s0] sm:$0xff] }
  0x41   :  { %1020 = vst [vmem:[%s2313_s1 + $0x2f0] sm:$0xff] %v1019_v62  ;;  %1022 = vst [vmem:[%s2313_s1 + $0x5f0] sm:$0xff] %v1021_v63  ;;  %v1024_v1 = vld [vmem:[%s2312_s0 + $0x300] sm:$0xff]  ;;  %v1038_v8 = vld [vmem:[%s2312_s0 + $0x18] sm:$0xff] }
  0x42   :  { %1023 = vst [vmem:[%s2313_s1 + $0x10] sm:$0xff] %v513_v0  ;;  %v1026_v2 = vld [vmem:[%s2312_s0 + $0xc0] sm:$0xff]  ;;  %1025 = vst [vmem:[%s2313_s1 + $0x310] sm:$0xff] %v1024_v1  ;;  %v1040_v9 = vld [vmem:[%s2312_s0 + $0x318] sm:$0xff] }
  0x43   :  { %v1028_v3 = vld [vmem:[%s2312_s0 + $0x3c0] sm:$0xff]  ;;  %1027 = vst [vmem:[%s2313_s1 + $0xd0] sm:$0xff] %v1026_v2  ;;  %1039 = vst [vmem:[%s2313_s1 + $0x28] sm:$0xff] %v1038_v8  ;;  %v1042_v10 = vld [vmem:[%s2312_s0 + $0xd8] sm:$0xff] }
  0x44   :  { %1029 = vst [vmem:[%s2313_s1 + $0x3d0] sm:$0xff] %v1028_v3  ;;  %v1030_v4 = vld [vmem:[%s2312_s0 + $0x180] sm:$0xff]  ;;  %1041 = vst [vmem:[%s2313_s1 + $0x328] sm:$0xff] %v1040_v9  ;;  %v1044_v11 = vld [vmem:[%s2312_s0 + $0x3d8] sm:$0xff] }
  0x45   :  { %v1032_v5 = vld [vmem:[%s2312_s0 + $0x480] sm:$0xff]  ;;  %1031 = vst [vmem:[%s2313_s1 + $0x190] sm:$0xff] %v1030_v4  ;;  %v1046_v12 = vld [vmem:[%s2312_s0 + $0x198] sm:$0xff]  ;;  %1043 = vst [vmem:[%s2313_s1 + $0xe8] sm:$0xff] %v1042_v10 }
  0x46   :  { %v1034_v6 = vld [vmem:[%s2312_s0 + $0x240] sm:$0xff]  ;;  %1033 = vst [vmem:[%s2313_s1 + $0x490] sm:$0xff] %v1032_v5  ;;  %1045 = vst [vmem:[%s2313_s1 + $0x3e8] sm:$0xff] %v1044_v11  ;;  %v1048_v13 = vld [vmem:[%s2312_s0 + $0x498] sm:$0xff] }
  0x47   :  { %1035 = vst [vmem:[%s2313_s1 + $0x250] sm:$0xff] %v1034_v6  ;;  %v1036_v7 = vld [vmem:[%s2312_s0 + $0x540] sm:$0xff]  ;;  %1047 = vst [vmem:[%s2313_s1 + $0x1a8] sm:$0xff] %v1046_v12  ;;  %v1050_v14 = vld [vmem:[%s2312_s0 + $0x258] sm:$0xff] }
  0x48   :  { %1037 = vst [vmem:[%s2313_s1 + $0x550] sm:$0xff] %v1036_v7  ;;  %v1052_v15 = vld [vmem:[%s2312_s0 + $0x558] sm:$0xff]  ;;  %1049 = vst [vmem:[%s2313_s1 + $0x4a8] sm:$0xff] %v1048_v13  ;;  %v1054_v16 = vld [vmem:[%s2312_s0 + $0x30] sm:$0xff] }
  0x49   :  { %1051 = vst [vmem:[%s2313_s1 + $0x268] sm:$0xff] %v1050_v14  ;;  %1053 = vst [vmem:[%s2313_s1 + $0x568] sm:$0xff] %v1052_v15  ;;  %v1056_v17 = vld [vmem:[%s2312_s0 + $0x330] sm:$0xff]  ;;  %v1070_v24 = vld [vmem:[%s2312_s0 + $0x48] sm:$0xff] }
  0x4a   :  { %v1058_v18 = vld [vmem:[%s2312_s0 + $0xf0] sm:$0xff]  ;;  %1055 = vst [vmem:[%s2313_s1 + $0x40] sm:$0xff] %v1054_v16  ;;  %1057 = vst [vmem:[%s2313_s1 + $0x340] sm:$0xff] %v1056_v17  ;;  %v1072_v25 = vld [vmem:[%s2312_s0 + $0x348] sm:$0xff] }
  0x4b   :  { %1059 = vst [vmem:[%s2313_s1 + $0x100] sm:$0xff] %v1058_v18  ;;  %v1060_v19 = vld [vmem:[%s2312_s0 + $0x3f0] sm:$0xff]  ;;  %1071 = vst [vmem:[%s2313_s1 + $0x58] sm:$0xff] %v1070_v24  ;;  %v1074_v26 = vld [vmem:[%s2312_s0 + $0x108] sm:$0xff] }
  0x4c   :  { %v1062_v20 = vld [vmem:[%s2312_s0 + $0x1b0] sm:$0xff]  ;;  %1061 = vst [vmem:[%s2313_s1 + $0x400] sm:$0xff] %v1060_v19  ;;  %v1076_v27 = vld [vmem:[%s2312_s0 + $0x408] sm:$0xff]  ;;  %1073 = vst [vmem:[%s2313_s1 + $0x358] sm:$0xff] %v1072_v25 }
  0x4d   :  { %v1064_v21 = vld [vmem:[%s2312_s0 + $0x4b0] sm:$0xff]  ;;  %1063 = vst [vmem:[%s2313_s1 + $0x1c0] sm:$0xff] %v1062_v20  ;;  %1075 = vst [vmem:[%s2313_s1 + $0x118] sm:$0xff] %v1074_v26  ;;  %v1078_v28 = vld [vmem:[%s2312_s0 + $0x1c8] sm:$0xff] }
  0x4e   :  { %1065 = vst [vmem:[%s2313_s1 + $0x4c0] sm:$0xff] %v1064_v21  ;;  %v1066_v22 = vld [vmem:[%s2312_s0 + $0x270] sm:$0xff]  ;;  %1077 = vst [vmem:[%s2313_s1 + $0x418] sm:$0xff] %v1076_v27  ;;  %v1080_v29 = vld [vmem:[%s2312_s0 + $0x4c8] sm:$0xff] }
  0x4f   :  { %v1068_v23 = vld [vmem:[%s2312_s0 + $0x570] sm:$0xff]  ;;  %1067 = vst [vmem:[%s2313_s1 + $0x280] sm:$0xff] %v1066_v22  ;;  %v1082_v30 = vld [vmem:[%s2312_s0 + $0x288] sm:$0xff]  ;;  %1079 = vst [vmem:[%s2313_s1 + $0x1d8] sm:$0xff] %v1078_v28 }
  0x50   :  { %1069 = vst [vmem:[%s2313_s1 + $0x580] sm:$0xff] %v1068_v23  ;;  %1081 = vst [vmem:[%s2313_s1 + $0x4d8] sm:$0xff] %v1080_v29  ;;  %v1084_v31 = vld [vmem:[%s2312_s0 + $0x588] sm:$0xff]  ;;  %v1086_v32 = vld [vmem:[%s2312_s0 + $0x60] sm:$0xff] }
  0x51   :  { %1083 = vst [vmem:[%s2313_s1 + $0x298] sm:$0xff] %v1082_v30  ;;  %v1088_v33 = vld [vmem:[%s2312_s0 + $0x360] sm:$0xff]  ;;  %1085 = vst [vmem:[%s2313_s1 + $0x598] sm:$0xff] %v1084_v31  ;;  %v1102_v40 = vld [vmem:[%s2312_s0 + $0x78] sm:$0xff] }
  0x52   :  { %1087 = vst [vmem:[%s2313_s1 + $0x70] sm:$0xff] %v1086_v32  ;;  %1089 = vst [vmem:[%s2313_s1 + $0x370] sm:$0xff] %v1088_v33  ;;  %v1090_v34 = vld [vmem:[%s2312_s0 + $0x120] sm:$0xff]  ;;  %v1104_v41 = vld [vmem:[%s2312_s0 + $0x378] sm:$0xff] }
  0x53   :  { %v1092_v35 = vld [vmem:[%s2312_s0 + $0x420] sm:$0xff]  ;;  %1091 = vst [vmem:[%s2313_s1 + $0x130] sm:$0xff] %v1090_v34  ;;  %v1106_v42 = vld [vmem:[%s2312_s0 + $0x138] sm:$0xff]  ;;  %1103 = vst [vmem:[%s2313_s1 + $0x88] sm:$0xff] %v1102_v40 }
  0x54   :  { %v1094_v36 = vld [vmem:[%s2312_s0 + $0x1e0] sm:$0xff]  ;;  %1093 = vst [vmem:[%s2313_s1 + $0x430] sm:$0xff] %v1092_v35  ;;  %1105 = vst [vmem:[%s2313_s1 + $0x388] sm:$0xff] %v1104_v41  ;;  %v1108_v43 = vld [vmem:[%s2312_s0 + $0x438] sm:$0xff] }
  0x55   :  { %1095 = vst [vmem:[%s2313_s1 + $0x1f0] sm:$0xff] %v1094_v36  ;;  %v1096_v37 = vld [vmem:[%s2312_s0 + $0x4e0] sm:$0xff]  ;;  %1107 = vst [vmem:[%s2313_s1 + $0x148] sm:$0xff] %v1106_v42  ;;  %v1110_v44 = vld [vmem:[%s2312_s0 + $0x1f8] sm:$0xff] }
  0x56   :  { %v1098_v38 = vld [vmem:[%s2312_s0 + $0x2a0] sm:$0xff]  ;;  %1097 = vst [vmem:[%s2313_s1 + $0x4f0] sm:$0xff] %v1096_v37  ;;  %v1112_v45 = vld [vmem:[%s2312_s0 + $0x4f8] sm:$0xff]  ;;  %1109 = vst [vmem:[%s2313_s1 + $0x448] sm:$0xff] %v1108_v43 }
  0x57   :  { %v1100_v39 = vld [vmem:[%s2312_s0 + $0x5a0] sm:$0xff]  ;;  %1099 = vst [vmem:[%s2313_s1 + $0x2b0] sm:$0xff] %v1098_v38  ;;  %1111 = vst [vmem:[%s2313_s1 + $0x208] sm:$0xff] %v1110_v44  ;;  %v1114_v46 = vld [vmem:[%s2312_s0 + $0x2b8] sm:$0xff] }
  0x58   :  { %1101 = vst [vmem:[%s2313_s1 + $0x5b0] sm:$0xff] %v1100_v39  ;;  %1113 = vst [vmem:[%s2313_s1 + $0x508] sm:$0xff] %v1112_v45  ;;  %v1116_v47 = vld [vmem:[%s2312_s0 + $0x5b8] sm:$0xff]  ;;  %v1118_v48 = vld [vmem:[%s2312_s0 + $0x90] sm:$0xff] }
  0x59   :  { %1115 = vst [vmem:[%s2313_s1 + $0x2c8] sm:$0xff] %v1114_v46  ;;  %1117 = vst [vmem:[%s2313_s1 + $0x5c8] sm:$0xff] %v1116_v47  ;;  %v1120_v49 = vld [vmem:[%s2312_s0 + $0x390] sm:$0xff]  ;;  %v1134_v56 = vld [vmem:[%s2312_s0 + $0xa8] sm:$0xff] }
  0x5a   :  { %1119 = vst [vmem:[%s2313_s1 + $0xa0] sm:$0xff] %v1118_v48  ;;  %v1122_v50 = vld [vmem:[%s2312_s0 + $0x150] sm:$0xff]  ;;  %1121 = vst [vmem:[%s2313_s1 + $0x3a0] sm:$0xff] %v1120_v49  ;;  %v1136_v57 = vld [vmem:[%s2312_s0 + $0x3a8] sm:$0xff] }
  0x5b   :  { %v1124_v51 = vld [vmem:[%s2312_s0 + $0x450] sm:$0xff]  ;;  %1123 = vst [vmem:[%s2313_s1 + $0x160] sm:$0xff] %v1122_v50  ;;  %1135 = vst [vmem:[%s2313_s1 + $0xb8] sm:$0xff] %v1134_v56  ;;  %v1138_v58 = vld [vmem:[%s2312_s0 + $0x168] sm:$0xff] }
  0x5c   :  { %1125 = vst [vmem:[%s2313_s1 + $0x460] sm:$0xff] %v1124_v51  ;;  %v1126_v52 = vld [vmem:[%s2312_s0 + $0x210] sm:$0xff]  ;;  %1137 = vst [vmem:[%s2313_s1 + $0x3b8] sm:$0xff] %v1136_v57  ;;  %v1140_v59 = vld [vmem:[%s2312_s0 + $0x468] sm:$0xff] }
  0x5d   :  { %v1128_v53 = vld [vmem:[%s2312_s0 + $0x510] sm:$0xff]  ;;  %1127 = vst [vmem:[%s2313_s1 + $0x220] sm:$0xff] %v1126_v52  ;;  %v1142_v60 = vld [vmem:[%s2312_s0 + $0x228] sm:$0xff]  ;;  %1139 = vst [vmem:[%s2313_s1 + $0x178] sm:$0xff] %v1138_v58 }
  0x5e   :  { %v1130_v54 = vld [vmem:[%s2312_s0 + $0x2d0] sm:$0xff]  ;;  %1129 = vst [vmem:[%s2313_s1 + $0x520] sm:$0xff] %v1128_v53  ;;  %1141 = vst [vmem:[%s2313_s1 + $0x478] sm:$0xff] %v1140_v59  ;;  %v1144_v61 = vld [vmem:[%s2312_s0 + $0x528] sm:$0xff] }
  0x5f   :  { %1131 = vst [vmem:[%s2313_s1 + $0x2e0] sm:$0xff] %v1130_v54  ;;  %v1132_v55 = vld [vmem:[%s2312_s0 + $0x5d0] sm:$0xff]  ;;  %1143 = vst [vmem:[%s2313_s1 + $0x238] sm:$0xff] %v1142_v60  ;;  %v1146_v62 = vld [vmem:[%s2312_s0 + $0x2e8] sm:$0xff] }
  0x60   :  { %1133 = vst [vmem:[%s2313_s1 + $0x5e0] sm:$0xff] %v1132_v55  ;;  %v1148_v63 = vld [vmem:[%s2312_s0 + $0x5e8] sm:$0xff]  ;;  %1145 = vst [vmem:[%s2313_s1 + $0x538] sm:$0xff] %v1144_v61 }
  0x61   :  { %1147 = vst [vmem:[%s2313_s1 + $0x2f8] sm:$0xff] %v1146_v62  ;;  %1149 = vst [vmem:[%s2313_s1 + $0x5f8] sm:$0xff] %v1148_v63 }

</bundles_post_ra>
